<compile_context>
chip_gen: v6e
topology: v6e:2x2x1
jax: 0.10.0
libtpu: 0.0.40
codegen_flags: <defaults>
</compile_context>

<pallas_src>
import math

import jax
import jax.numpy as jnp
from jax.experimental import pallas as pl
from jax.experimental.pallas import tpu as pltpu


_LANE = 128
# ~640 KiB f32 input per tile at 32K rows; double-buffered in+out + intermediates
# stays well under v7x's 32 MiB scoped VMEM default. Sweep 32K/64K/128K for prod.
_TILE_B_MAX = 32 * 1024


def _round_up(x, m):
    return ((x + m - 1) // m) * m


def _mlp_kernel(xT_ref, w1_ref, b1_ref, w2_ref, b2_ref, w3_ref, b3_ref, oT_ref):
    # Lane-dense layout: batch on lanes, features on sublanes.
    xT = xT_ref[...]                                                     # (5, TILE_B)
    # fc1 + relu : (10,5) @ (5,TILE_B) + (10,1)
    h1 = jnp.dot(w1_ref[...], xT, preferred_element_type=jnp.float32) + b1_ref[...]
    h1 = jnp.maximum(h1, 0.0)                                            # (10, TILE_B)
    # fc2 + relu : (5,10) @ (10,TILE_B) + (5,1)
    h2 = jnp.dot(w2_ref[...], h1, preferred_element_type=jnp.float32) + b2_ref[...]
    h2 = jnp.maximum(h2, 0.0)                                            # (5, TILE_B)
    # fc3 (no activation) : (5,5) @ (5,TILE_B) + (5,1)
    oT_ref[...] = jnp.dot(w3_ref[...], h2, preferred_element_type=jnp.float32) + b3_ref[...]


def weather_nn_forward(x, params, *, tile_b=None):
    """x: (B, 5) float32.  params: torch-layout weights w*: (out, in), biases b*: (out, 1)."""
    # NOTE: at tiny batch (e.g. B=8) a plain jnp chain is at least as fast as any
    # Pallas kernel; this path is meant for large B where tiling/layout matter.
    B, f_in = x.shape
    w1, b1 = params["w1"], params["b1"]
    w2, b2 = params["w2"], params["b2"]
    w3, b3 = params["w3"], params["b3"]
    f_out = w3.shape[0]

    if tile_b is None:
        tile_b = min(_TILE_B_MAX, _round_up(B, _LANE))
    tile_b = _round_up(tile_b, _LANE)
    b_pad = _round_up(B, tile_b)
    num_tiles = b_pad // tile_b

    # Batch onto the lane axis; pad lanes so the block evenly divides the array.
    # Padded columns compute bias-only garbage that is discarded on slice-back.
    xT = jnp.pad(x.T.astype(jnp.float32), ((0, 0), (0, b_pad - B)))      # (5, b_pad)

    resident = lambda shape: pl.BlockSpec(shape, lambda i: (0,) * len(shape))

    weight_bytes = 4 * sum(int(p.size) for p in (w1, b1, w2, b2, w3, b3))
    cost = pl.CostEstimate(
        flops=2 * int(w1.size + w2.size + w3.size) * b_pad,              # ~250 * B
        transcendentals=0,
        bytes_accessed=4 * (f_in + f_out) * b_pad + weight_bytes,
    )

    outT = pl.pallas_call(
        _mlp_kernel,
        out_shape=jax.ShapeDtypeStruct((f_out, b_pad), jnp.float32),
        grid=(num_tiles,),
        in_specs=[
            pl.BlockSpec((f_in, tile_b), lambda i: (0, i)),              # x^T tile
            resident(w1.shape), resident(b1.shape),                      # weights resident
            resident(w2.shape), resident(b2.shape),
            resident(w3.shape), resident(b3.shape),
        ],
        out_specs=pl.BlockSpec((f_out, tile_b), lambda i: (0, i)),       # lane-dense output
        compiler_params=pltpu.CompilerParams(
            dimension_semantics=("parallel",),           # independent batch tiles (2 TCs on v7x)
            vmem_limit_bytes=32 * 1024 * 1024,           # explicit; fits v7x's 64 MiB VMEM easily
        ),
        cost_estimate=cost,
    )(xT, w1, b1, w2, b2, w3, b3)

    return outT[:, :B].T                                                 # back to (B, 5)


# ---- parameter init matching the PyTorch module (torch-native (out, in) layout) ----

def _xavier_uniform(key, fan_out, fan_in):
    # torch.nn.init.xavier_uniform_ (gain=1): U(-a, a), a = sqrt(6/(fan_in+fan_out)).
    a = math.sqrt(6.0 / (fan_in + fan_out))
    return jax.random.uniform(key, (fan_out, fan_in), jnp.float32, minval=-a, maxval=a)


def _linear_bias_init(key, fan_in, fan_out):
    # torch.nn.Linear default bias init: U(-1/sqrt(fan_in), 1/sqrt(fan_in)); stored (out, 1)
    # so it broadcasts across lanes (batch) in the transposed layout.
    bound = 1.0 / math.sqrt(fan_in)
    return jax.random.uniform(key, (fan_out, 1), jnp.float32, minval=-bound, maxval=bound)


def init_params(key):
    k1, k2, k3, k4, k5, k6 = jax.random.split(key, 6)
    return {
        "w1": _xavier_uniform(k1, 10, 5), "b1": _linear_bias_init(k2, 5, 10),
        "w2": _xavier_uniform(k3, 5, 10), "b2": _linear_bias_init(k4, 10, 5),
        "w3": _xavier_uniform(k5, 5, 5),  "b3": _linear_bias_init(k6, 5, 5),
    }


def _reference(x, params):
    h = jnp.maximum(x @ params["w1"].T + params["b1"].T, 0.0)
    h = jnp.maximum(h @ params["w2"].T + params["b2"].T, 0.0)
    return h @ params["w3"].T + params["b3"].T


if __name__ == "__main__":
    key = jax.random.PRNGKey(0)
    pkey, xkey1, xkey2 = jax.random.split(key, 3)
    params = init_params(pkey)

    # Small primary check: batch=8, 5 weather features (single 128-lane tile).
    x_small = jax.random.normal(xkey1, (8, 5), jnp.float32)
    out_small = jax.block_until_ready(weather_nn_forward(x_small, params))
    assert out_small.shape == (8, 5)
    assert jnp.allclose(out_small, _reference(x_small, params), atol=1e-5, rtol=1e-5)

    # Exercise batch tiling + padding: B=200 with tile_b=128 -> 2 grid steps.
    x_tiled = jax.random.normal(xkey2, (200, 5), jnp.float32)
    out_tiled = jax.block_until_ready(weather_nn_forward(x_tiled, params, tile_b=128))
    assert out_tiled.shape == (200, 5)
    assert jnp.allclose(out_tiled, _reference(x_tiled, params), atol=1e-5, rtol=1e-5)

    print("KERNEL_OK")
</pallas_src>

<mosaic_0001>
module attributes {stable_mosaic.version = 11 : i64} {
  func.func @_mlp_kernel(%arg0: i32, %arg1: memref<5x128xf32, #tpu.memory_space<vmem>>, %arg2: memref<10x5xf32, #tpu.memory_space<vmem>>, %arg3: memref<10x1xf32, #tpu.memory_space<vmem>>, %arg4: memref<5x10xf32, #tpu.memory_space<vmem>>, %arg5: memref<5x1xf32, #tpu.memory_space<vmem>>, %arg6: memref<5x5xf32, #tpu.memory_space<vmem>>, %arg7: memref<5x1xf32, #tpu.memory_space<vmem>>, %arg8: memref<5x128xf32, #tpu.memory_space<vmem>>) attributes {dimension_semantics = [#tpu.dimension_semantics<parallel>], iteration_bounds = array<i64: 1>, scalar_prefetch = 0 : i64, scratch_operands = 0 : i64, tpu.core_type = #tpu.core_type<tc>, window_params = [{transform_indices = @transform_0, window_bounds = array<i64: 5, 128>}, {pipeline_mode = #tpu.pipeline_mode<synchronous>, transform_indices = @transform_1, window_bounds = array<i64: 10, 5>}, {pipeline_mode = #tpu.pipeline_mode<synchronous>, transform_indices = @transform_2, window_bounds = array<i64: 10, 1>}, {pipeline_mode = #tpu.pipeline_mode<synchronous>, transform_indices = @transform_3, window_bounds = array<i64: 5, 10>}, {pipeline_mode = #tpu.pipeline_mode<synchronous>, transform_indices = @transform_4, window_bounds = array<i64: 5, 1>}, {pipeline_mode = #tpu.pipeline_mode<synchronous>, transform_indices = @transform_5, window_bounds = array<i64: 5, 5>}, {pipeline_mode = #tpu.pipeline_mode<synchronous>, transform_indices = @transform_6, window_bounds = array<i64: 5, 1>}, {transform_indices = @transform_7, window_bounds = array<i64: 5, 128>}]} {
    %c0 = arith.constant 0 : index
    %c0_0 = arith.constant 0 : index
    %0 = vector.load %arg1[%c0, %c0_0] : memref<5x128xf32, #tpu.memory_space<vmem>>, vector<5x128xf32>
    %c0_1 = arith.constant 0 : index
    %c0_2 = arith.constant 0 : index
    %1 = vector.load %arg2[%c0_1, %c0_2] : memref<10x5xf32, #tpu.memory_space<vmem>>, vector<10x5xf32>
    %cst = arith.constant dense<0.000000e+00> : vector<10x128xf32>
    %2 = tpu.matmul %1, %0, %cst {dimension_numbers = #tpu.dot_dimension_numbers<[1], [0], [0], [1], [0, 0, 1, 1], [], []>} : vector<10x5xf32>, vector<5x128xf32>, vector<10x128xf32> -> vector<10x128xf32>
    %c0_3 = arith.constant 0 : index
    %c0_4 = arith.constant 0 : index
    %3 = vector.load %arg3[%c0_3, %c0_4] : memref<10x1xf32, #tpu.memory_space<vmem>>, vector<10x1xf32>
    %4 = vector.broadcast %3 : vector<10x1xf32> to vector<10x128xf32>
    %5 = arith.addf %2, %4 : vector<10x128xf32>
    %cst_5 = arith.constant 0.000000e+00 : f32
    %6 = vector.broadcast %cst_5 : f32 to vector<10x128xf32>
    %7 = arith.maximumf %5, %6 : vector<10x128xf32>
    %c0_6 = arith.constant 0 : index
    %c0_7 = arith.constant 0 : index
    %8 = vector.load %arg4[%c0_6, %c0_7] : memref<5x10xf32, #tpu.memory_space<vmem>>, vector<5x10xf32>
    %cst_8 = arith.constant dense<0.000000e+00> : vector<5x128xf32>
    %9 = tpu.matmul %8, %7, %cst_8 {dimension_numbers = #tpu.dot_dimension_numbers<[1], [0], [0], [1], [0, 0, 1, 1], [], []>} : vector<5x10xf32>, vector<10x128xf32>, vector<5x128xf32> -> vector<5x128xf32>
    %c0_9 = arith.constant 0 : index
    %c0_10 = arith.constant 0 : index
    %10 = vector.load %arg5[%c0_9, %c0_10] : memref<5x1xf32, #tpu.memory_space<vmem>>, vector<5x1xf32>
    %11 = vector.broadcast %10 : vector<5x1xf32> to vector<5x128xf32>
    %12 = arith.addf %9, %11 : vector<5x128xf32>
    %cst_11 = arith.constant 0.000000e+00 : f32
    %13 = vector.broadcast %cst_11 : f32 to vector<5x128xf32>
    %14 = arith.maximumf %12, %13 : vector<5x128xf32>
    %c0_12 = arith.constant 0 : index
    %c0_13 = arith.constant 0 : index
    %15 = vector.load %arg6[%c0_12, %c0_13] : memref<5x5xf32, #tpu.memory_space<vmem>>, vector<5x5xf32>
    %cst_14 = arith.constant dense<0.000000e+00> : vector<5x128xf32>
    %16 = tpu.matmul %15, %14, %cst_14 {dimension_numbers = #tpu.dot_dimension_numbers<[1], [0], [0], [1], [0, 0, 1, 1], [], []>} : vector<5x5xf32>, vector<5x128xf32>, vector<5x128xf32> -> vector<5x128xf32>
    %c0_15 = arith.constant 0 : index
    %c0_16 = arith.constant 0 : index
    %17 = vector.load %arg7[%c0_15, %c0_16] : memref<5x1xf32, #tpu.memory_space<vmem>>, vector<5x1xf32>
    %18 = vector.broadcast %17 : vector<5x1xf32> to vector<5x128xf32>
    %19 = arith.addf %16, %18 : vector<5x128xf32>
    %c0_17 = arith.constant 0 : index
    %c0_18 = arith.constant 0 : index
    %20 = vector.load %arg8[%c0_17, %c0_18] : memref<5x128xf32, #tpu.memory_space<vmem>>, vector<5x128xf32>
    tpu.vector_store %arg8[%c0_17, %c0_18], %19 {strides = array<i32>} : memref<5x128xf32, #tpu.memory_space<vmem>>, vector<5x128xf32>,
    return
  }
  func.func @transform_0(%arg0: i32) -> (i32, i32) {
    %c0_i32 = arith.constant 0 : i32
    %c0_i32_0 = arith.constant 0 : i32
    return %c0_i32, %arg0 : i32, i32
  }
  func.func @transform_1(%arg0: i32) -> (i32, i32) {
    %c0_i32 = arith.constant 0 : i32
    %c0_i32_0 = arith.constant 0 : i32
    %c0_i32_1 = arith.constant 0 : i32
    return %c0_i32, %c0_i32_0 : i32, i32
  }
  func.func @transform_2(%arg0: i32) -> (i32, i32) {
    %c0_i32 = arith.constant 0 : i32
    %c0_i32_0 = arith.constant 0 : i32
    %c0_i32_1 = arith.constant 0 : i32
    return %c0_i32, %c0_i32_0 : i32, i32
  }
  func.func @transform_3(%arg0: i32) -> (i32, i32) {
    %c0_i32 = arith.constant 0 : i32
    %c0_i32_0 = arith.constant 0 : i32
    %c0_i32_1 = arith.constant 0 : i32
    return %c0_i32, %c0_i32_0 : i32, i32
  }
  func.func @transform_4(%arg0: i32) -> (i32, i32) {
    %c0_i32 = arith.constant 0 : i32
    %c0_i32_0 = arith.constant 0 : i32
    %c0_i32_1 = arith.constant 0 : i32
    return %c0_i32, %c0_i32_0 : i32, i32
  }
  func.func @transform_5(%arg0: i32) -> (i32, i32) {
    %c0_i32 = arith.constant 0 : i32
    %c0_i32_0 = arith.constant 0 : i32
    %c0_i32_1 = arith.constant 0 : i32
    return %c0_i32, %c0_i32_0 : i32, i32
  }
  func.func @transform_6(%arg0: i32) -> (i32, i32) {
    %c0_i32 = arith.constant 0 : i32
    %c0_i32_0 = arith.constant 0 : i32
    %c0_i32_1 = arith.constant 0 : i32
    return %c0_i32, %c0_i32_0 : i32, i32
  }
  func.func @transform_7(%arg0: i32) -> (i32, i32) {
    %c0_i32 = arith.constant 0 : i32
    %c0_i32_0 = arith.constant 0 : i32
    return %c0_i32, %arg0 : i32, i32
  }
}

</mosaic_0001>

<bundles_post_ra>
// kernel: tpu_custom_call.1
= control target key start
LH: loop header
LB: loop body
LE: loop exit
PB: predicated region body
PF: predicated region fallthrough
CT: control target
= control target key end

     0   :  { %vm49_vm0 = vcmask 1044480   ;;  %vm42_vm1 = vcmask 39936   ;;  %v374_v4 = vmov 0   ;;  %s454_s0 = inlined_call_operand.vmem [shape: f32[5,128], index: 0, kind: input, shape index: {}]   ;;  %s455_s1 = inlined_call_operand.vmem [shape: f32[10,5], index: 1, kind: input, shape index: {}]   ;;  %s456_s2 = inlined_call_operand.vmem [shape: f32[10,1], index: 2, kind: input, shape index: {}]   ;;  %s457_s3 = inlined_call_operand.vmem [shape: f32[5,10], index: 3, kind: input, shape index: {}]   ;;  %s458_s4 = inlined_call_operand.vmem [shape: f32[5,1], index: 4, kind: input, shape index: {}]   ;;  %s459_s5 = inlined_call_operand.vmem [shape: f32[5,5], index: 5, kind: input, shape index: {}]   ;;  %s460_s6 = inlined_call_operand.vmem [shape: f32[5,1], index: 6, kind: input, shape index: {}]   ;;  %s461_s7 = inlined_call_operand.hbm [shape: f32[5,128], index: 7, kind: output, shape index: {}]  }
   0x1   :  { %v27_v0 = vld [vmem:[%s454_s0] sm:$0x1f]  ;;  %v29_v2 = vld [vmem:[%s455_s1 + $0x8] sm:$0x3]  ;;  %350 = vset.pattern.permute.xlu0 %v374_v4 }
   0x2   :  { %v28_v1 = vld [vmem:[%s455_s1] sm:$0xff]  ;;  %329 = vmatprep.subr.msk.mxu0 %vm49_vm0, %v27_v0  ;;  %v31_v3 = vld [vmem:[%s456_s2 + $0x8] sm:$0x3] }
   0x3   :  { %331 = vmatprep.mubr.msk.f32.mxu0 %vm42_vm1, %v28_v1  ;;  %330 = vmatpush3.msk.msra.mxu0 %vm49_vm0, %v27_v0 }
   0x4   :  { %12 = vsyncpa [#allocation3], 0  ;;  %332 = vmatmul.mubr.msk.f32.vlgmr.msra.gmra.mxu0 %vm42_vm1, %v29_v2  ;;  %39 = vperm.xlu0 %350, %v31_v3   ;;  %v30_v5 = vld [vmem:[%s456_s2] sm:$0xff]  ;;  %v375_v6 = vmov 0.0   ;;  %vm376_vm2 = vmmov 0   ;;  %vm141_vm3 = vcmask 1041408  }
   0x5   :  { %351 = vset.pattern.permute.xlu1 %v374_v4  ;;  %334 = vmatprep.subr.mxu1 %v375_v6  ;;  %v131_v7 = vld [vmem:[%s458_s4] sm:$0x1f]  ;;  %vm137_vm4 = vcmask 80896   ;;  %s377_s14 = smov [#allocation2]  }
   0x6   :  { %341 = vmatprep.subr.mxu0 %v375_v6  ;;  %338 = vmatprep.mubr.msk.f32.mxu1 %vm376_vm2, %v375_v6  ;;  %v217_v8 = vld [vmem:[%s460_s6] sm:$0x1f]  ;;  %s306_s15 = sshll.u32 %s377_s14, 4  ;;  %s307_s15 = int_to_ptr.vmem [resolvable:$true] %s306_s15 }
   0x7   :  { %343 = vmatprep.mubr.msk.f32.mxu0 %vm376_vm2, %v375_v6  ;;  %134 = vperm.xlu1 %351, %v131_v7   ;;  %v130_v17 = vld [vmem:[%s457_s3] sm:$0x1f]  ;;  %s352_s3 = scalar_lea.vmem %s307_s15, 128  ;;  %p357_p1 = scmp.lt.s32.totalorder %s307_s15, %s307_s15 }
   0x8   :  { %34 = vperm.xlu0 %350, %v30_v5   ;;  %v216_v23 = vld [vmem:[%s459_s5] sm:$0x1f]  ;;  %p353_p0 = scmp.ne.s32.totalorder %s307_s15, %s352_s3  ;;  %p358_p2 = scmp.lt.s32.totalorder %s352_s3, %s352_s3 }
   0xa   :  { %p359_p3 = por %p358_p2, %p357_p1 }
   0xb   :  { %220 = vperm.xlu1 %351, %v217_v8  }
   0xc   :  { %p360_p4 = pnand %p359_p3, %p353_p0 }
  0x7f   :  { %v40_v9 = vpop.permute.xlu0 %39 }
  0x82   :  { %v135_v18 = vpop.permute.xlu1 %134 }
  0x83   :  { %v35_v12 = vpop.permute.xlu0 %34 }
  0x86   :  { %v221_v24 = vpop.permute.xlu1 %220 }
  0xc4   :  { %v333_v10 = vpop.f32.mrf.mxu0 }
  0xc5   :  { %v125_v11 = vadd.f32 %v333_v10, %v40_v9 }
  0xc6   :  { %v119_v13 = vpop.f32.mrf.mxu0 }
  0xc7   :  { %v129_v14 = vmax.f32 %v125_v11, 0.0  ;;  %v120_v15 = vadd.f32 %v119_v13, %v35_v12 }
  0xc9   :  { %v128_v16 = vmax.f32 %v120_v15, 0.0  ;;  %335 = vmatpush3.msk.msra.mxu1 %vm141_vm3, %v129_v14 }
  0xca   :  { %336 = vmatprep.subr.mxu1 %v375_v6 }
  0xcb   :  { %337 = vmatpush3.msra.mxu1 %v128_v16 }
  0xcc   :  { %339 = vmatmul.mubr.msk.f32.vlgmr.msra.gmra.mxu1 %vm137_vm4, %v130_v17 }
 0x18c   :  { %v211_v19 = vpop.f32.mrf.mxu1 }
 0x18d   :  { %v212_v20 = vadd.f32 %v211_v19, %v135_v18 }
 0x18e   :  { %v340_v21 = vpop.f32.mrf.mxu1 }
 0x18f   :  { %v215_v22 = vmax.f32 %v212_v20, 0.0 }
 0x191   :  { %342 = vmatpush3.msk.msra.mxu0 %vm49_vm0, %v215_v22 }
 0x192   :  { %344 = vmatmul.mubr.msk.f32.vlgmr.msra.gmra.mxu0 %vm42_vm1, %v216_v23 }
 0x252   :  { %v295_v25 = vpop.f32.mrf.mxu0 }
 0x253   :  { %v296_v26 = vadd.f32 %v295_v25, %v221_v24 }
 0x254   :  { %v345_v27 = vpop.f32.mrf.mxu0 }
 0x255   :  { %299 = vst [vmem:[#allocation2] sm:$0x1f] %v296_v26 }
 0x256   :  { %363 = shalt.err (!%p360_p4)
}
 0x257   :  { %309 = dma.vmem_to_hbm [thread:$0]  %s307_s15, 128, %s461_s7, [#allocation3]  }
 0x258   :  { %372 = dma.done.wait [#allocation3], 128  }
 0x259   :  { %373 = vsyncadd [#allocation3], 4294967168 }
 0x25a   :  { %313 = vsyncpa [#allocation3], 1 }

</bundles_post_ra>
